<compile_context>
chip_gen: v7x
topology: tpu7x:2x2x1
jax: 0.10.0
libtpu: 0.0.40
codegen_flags: <defaults>
</compile_context>

<pallas_src>
import jax
import jax.numpy as jnp
from jax.experimental import pallas as pl
from jax.experimental.pallas import tpu as pltpu  # noqa: F401  (TPU backend)

_LANE = 128


def _round_up(n, m):
    return ((n + m - 1) // m) * m


# ----------------------------------------------------------------------------
# Fused Pallas kernel: chained Linear(+ReLU) layers, last layer has no ReLU.
# ----------------------------------------------------------------------------
def _make_fused_mlp_kernel(n_layers):
    def kernel(*refs):
        x_ref = refs[0]
        o_ref = refs[-1]
        p_refs = refs[1:-1]  # (w0, b0, w1, b1, ..., w_last, b_last)
        h = x_ref[...]
        for i in range(n_layers):  # static unroll at trace time
            w = p_refs[2 * i][...]
            b = p_refs[2 * i + 1][...]
            h = jnp.dot(h, w, preferred_element_type=jnp.float32) + b
            if i < n_layers - 1:
                h = jnp.maximum(h, 0.0)  # ReLU rides free in the VPU slot
        o_ref[...] = h.astype(o_ref.dtype)

    return kernel


def fused_mlp_pallas(z, packed_layers):
    """Run the whole packed MLP in one pallas_call.

    packed_layers: list of (w[in, out_pad], b[1, out_pad]) with lane-padded
    output dims; ReLU is applied between layers, not after the last one.
    """
    B = z.shape[0]
    n_layers = len(packed_layers)
    out_pad = packed_layers[-1][0].shape[1]
    kernel = _make_fused_mlp_kernel(n_layers)

    def full_spec(shape):
        nd = len(shape)
        return pl.BlockSpec(shape, lambda *_: (0,) * nd)

    in_specs = [full_spec(z.shape)]
    args = [z]
    for w, b in packed_layers:
        in_specs.append(full_spec(w.shape))
        in_specs.append(full_spec(b.shape))
        args.append(w)
        args.append(b)

    return pl.pallas_call(
        kernel,
        out_shape=jax.ShapeDtypeStruct((B, out_pad), z.dtype),
        in_specs=in_specs,
        out_specs=full_spec((B, out_pad)),
    )(*args)


# ----------------------------------------------------------------------------
# PRIORREG parameters: PyTorch-style init + one-time packing for the kernel.
# ----------------------------------------------------------------------------
def init_priorreg_params(key, in_dim, hidden_dims, out_dim, make_prior):
    """Mimics nn.Linear default init: U(-1/sqrt(fan_in), 1/sqrt(fan_in)).
    Weights stored already transposed as [in, out] (x @ W_T + b)."""

    def make_linear(k, fan_in, fan_out):
        k_w, k_b = jax.random.split(k)
        bound = 1.0 / (fan_in ** 0.5)
        w = jax.random.uniform(k_w, (fan_in, fan_out), jnp.float32, -bound, bound)
        b = jax.random.uniform(k_b, (fan_out,), jnp.float32, -bound, bound)
        return w, b

    params = {"block": [], "make_prior": make_prior}
    last = in_dim
    for dim in hidden_dims:
        key, sub = jax.random.split(key)
        params["block"].append(make_linear(sub, last, dim))
        last = dim
    if make_prior:
        key, k_mu = jax.random.split(key)
        key, k_var = jax.random.split(key)
        params["fc_mu"] = make_linear(k_mu, last, out_dim)
        params["fc_var"] = make_linear(k_var, last, out_dim)
    else:
        key, sub = jax.random.split(key)
        params["block"].append(make_linear(sub, last, out_dim))
    return params


def pack_priorreg_params(params, make_prior):
    """One-time pre-packing for the fused kernel:
      - lane (output) dims zero-padded to multiples of 128 (lane-dense stores),
      - biases stored as [1, out_pad] rows,
      - mu/var heads concatenated along the output axis -> one matmul.
    Returns (packed_layers, out_pad) where out_pad is the padded per-head width.
    """
    packed = []
    prev_pad = None  # padded feature width feeding the current layer
    for (w, b) in params["block"]:
        fan_in, fan_out = w.shape
        in_pad = fan_in if prev_pad is None else prev_pad
        out_pad_dim = _round_up(fan_out, _LANE)
        w_p = jnp.zeros((in_pad, out_pad_dim), w.dtype).at[:fan_in, :fan_out].set(w)
        b_p = jnp.zeros((1, out_pad_dim), b.dtype).at[0, :fan_out].set(b)
        packed.append((w_p, b_p))
        prev_pad = out_pad_dim

    if make_prior:
        w_mu, b_mu = params["fc_mu"]
        w_var, b_var = params["fc_var"]
        fan_in, fan_out = w_mu.shape
        in_pad = fan_in if prev_pad is None else prev_pad
        out_pad_dim = _round_up(fan_out, _LANE)
        w_h = jnp.zeros((in_pad, 2 * out_pad_dim), w_mu.dtype)
        w_h = w_h.at[:fan_in, :fan_out].set(w_mu)
        w_h = w_h.at[:fan_in, out_pad_dim:out_pad_dim + fan_out].set(w_var)
        b_h = jnp.zeros((1, 2 * out_pad_dim), b_mu.dtype)
        b_h = b_h.at[0, :fan_out].set(b_mu)
        b_h = b_h.at[0, out_pad_dim:out_pad_dim + fan_out].set(b_var)
        packed.append((w_h, b_h))
        return packed, out_pad_dim

    last_out = params["block"][-1][0].shape[1]
    return packed, _round_up(last_out, _LANE)


# ----------------------------------------------------------------------------
# Forward pass (single fused pallas_call + cheap wrapper-side slicing)
# ----------------------------------------------------------------------------
def priorreg_forward(packed_layers, out_dim, out_pad, make_prior, z):
    out = fused_mlp_pallas(z, packed_layers)
    if make_prior:
        mu = out[:, :out_dim]
        var = out[:, out_pad:out_pad + out_dim]
        return mu, var
    return out[:, :out_dim]


# ----------------------------------------------------------------------------
# Pure-JAX reference (unpadded, matches the PyTorch module exactly)
# ----------------------------------------------------------------------------
def priorreg_ref(params, z, hidden_dims, make_prior):
    n_hidden = len(hidden_dims)
    for i in range(n_hidden):
        w, b = params["block"][i]
        z = jnp.maximum(z @ w + b, 0.0)
    if make_prior:
        w_mu, b_mu = params["fc_mu"]
        w_var, b_var = params["fc_var"]
        return z @ w_mu + b_mu, z @ w_var + b_var
    else:
        w, b = params["block"][n_hidden]
        return z @ w + b


if __name__ == "__main__":
    key = jax.random.PRNGKey(0)

    batch = 8
    in_dim = 32
    hidden_dims = [64, 48]
    out_dim = 16

    k_params, k_x = jax.random.split(key)
    z = jax.random.normal(k_x, (batch, in_dim), jnp.float32)

    # --- make_prior=True path: returns (mu, var) ---
    params_p = init_priorreg_params(k_params, in_dim, hidden_dims, out_dim,
                                    make_prior=True)
    packed_p, out_pad_p = pack_priorreg_params(params_p, make_prior=True)
    mu, var = priorreg_forward(packed_p, out_dim, out_pad_p, True, z)
    mu, var = jax.block_until_ready((mu, var))
    mu_ref, var_ref = priorreg_ref(params_p, z, hidden_dims, make_prior=True)
    assert mu.shape == (batch, out_dim) and var.shape == (batch, out_dim)
    assert jnp.allclose(mu, mu_ref, atol=2e-5, rtol=2e-5)
    assert jnp.allclose(var, var_ref, atol=2e-5, rtol=2e-5)

    # --- make_prior=False path: returns single output ---
    params_r = init_priorreg_params(k_params, in_dim, hidden_dims, out_dim,
                                    make_prior=False)
    packed_r, out_pad_r = pack_priorreg_params(params_r, make_prior=False)
    out = priorreg_forward(packed_r, out_dim, out_pad_r, False, z)
    out = jax.block_until_ready(out)
    out_ref = priorreg_ref(params_r, z, hidden_dims, make_prior=False)
    assert out.shape == (batch, out_dim)
    assert jnp.allclose(out, out_ref, atol=2e-5, rtol=2e-5)

    print("KERNEL_OK")
</pallas_src>

<mosaic_0001>
module attributes {stable_mosaic.version = 11 : i64} {
  func.func @kernel(%arg0: memref<8x32xf32, #tpu.memory_space<vmem>>, %arg1: memref<32x128xf32, #tpu.memory_space<vmem>>, %arg2: memref<1x128xf32, #tpu.memory_space<vmem>>, %arg3: memref<128x128xf32, #tpu.memory_space<vmem>>, %arg4: memref<1x128xf32, #tpu.memory_space<vmem>>, %arg5: memref<128x256xf32, #tpu.memory_space<vmem>>, %arg6: memref<1x256xf32, #tpu.memory_space<vmem>>, %arg7: memref<8x256xf32, #tpu.memory_space<vmem>>) attributes {dimension_semantics = [], scalar_prefetch = 0 : i64, scratch_operands = 0 : i64, tpu.core_type = #tpu.core_type<tc>} {
    %c0 = arith.constant 0 : index
    %c0_0 = arith.constant 0 : index
    %0 = vector.load %arg0[%c0, %c0_0] : memref<8x32xf32, #tpu.memory_space<vmem>>, vector<8x32xf32>
    %c0_1 = arith.constant 0 : index
    %c0_2 = arith.constant 0 : index
    %1 = vector.load %arg1[%c0_1, %c0_2] : memref<32x128xf32, #tpu.memory_space<vmem>>, vector<32x128xf32>
    %c0_3 = arith.constant 0 : index
    %c0_4 = arith.constant 0 : index
    %2 = vector.load %arg2[%c0_3, %c0_4] : memref<1x128xf32, #tpu.memory_space<vmem>>, vector<1x128xf32>
    %cst = arith.constant dense<0.000000e+00> : vector<8x128xf32>
    %3 = tpu.matmul %0, %1, %cst {dimension_numbers = #tpu.dot_dimension_numbers<[1], [0], [0], [1], [0, 0, 1, 1], [], []>} : vector<8x32xf32>, vector<32x128xf32>, vector<8x128xf32> -> vector<8x128xf32>
    %4 = vector.broadcast %2 : vector<1x128xf32> to vector<8x128xf32>
    %5 = arith.addf %3, %4 : vector<8x128xf32>
    %cst_5 = arith.constant 0.000000e+00 : f32
    %6 = vector.broadcast %cst_5 : f32 to vector<8x128xf32>
    %7 = arith.maximumf %5, %6 : vector<8x128xf32>
    %c0_6 = arith.constant 0 : index
    %c0_7 = arith.constant 0 : index
    %8 = vector.load %arg3[%c0_6, %c0_7] : memref<128x128xf32, #tpu.memory_space<vmem>>, vector<128x128xf32>
    %c0_8 = arith.constant 0 : index
    %c0_9 = arith.constant 0 : index
    %9 = vector.load %arg4[%c0_8, %c0_9] : memref<1x128xf32, #tpu.memory_space<vmem>>, vector<1x128xf32>
    %cst_10 = arith.constant dense<0.000000e+00> : vector<8x128xf32>
    %10 = tpu.matmul %7, %8, %cst_10 {dimension_numbers = #tpu.dot_dimension_numbers<[1], [0], [0], [1], [0, 0, 1, 1], [], []>} : vector<8x128xf32>, vector<128x128xf32>, vector<8x128xf32> -> vector<8x128xf32>
    %11 = vector.broadcast %9 : vector<1x128xf32> to vector<8x128xf32>
    %12 = arith.addf %10, %11 : vector<8x128xf32>
    %cst_11 = arith.constant 0.000000e+00 : f32
    %13 = vector.broadcast %cst_11 : f32 to vector<8x128xf32>
    %14 = arith.maximumf %12, %13 : vector<8x128xf32>
    %c0_12 = arith.constant 0 : index
    %c0_13 = arith.constant 0 : index
    %15 = vector.load %arg5[%c0_12, %c0_13] : memref<128x256xf32, #tpu.memory_space<vmem>>, vector<128x256xf32>
    %c0_14 = arith.constant 0 : index
    %c0_15 = arith.constant 0 : index
    %16 = vector.load %arg6[%c0_14, %c0_15] : memref<1x256xf32, #tpu.memory_space<vmem>>, vector<1x256xf32>
    %cst_16 = arith.constant dense<0.000000e+00> : vector<8x256xf32>
    %17 = tpu.matmul %14, %15, %cst_16 {dimension_numbers = #tpu.dot_dimension_numbers<[1], [0], [0], [1], [0, 0, 1, 1], [], []>} : vector<8x128xf32>, vector<128x256xf32>, vector<8x256xf32> -> vector<8x256xf32>
    %18 = vector.broadcast %16 : vector<1x256xf32> to vector<8x256xf32>
    %19 = arith.addf %17, %18 : vector<8x256xf32>
    %c0_17 = arith.constant 0 : index
    %c0_18 = arith.constant 0 : index
    %20 = vector.load %arg7[%c0_17, %c0_18] : memref<8x256xf32, #tpu.memory_space<vmem>>, vector<8x256xf32>
    tpu.vector_store %arg7[%c0_17, %c0_18], %19 {strides = array<i32>} : memref<8x256xf32, #tpu.memory_space<vmem>>, vector<8x256xf32>,
    return
  }
}

</mosaic_0001>

<bundles_post_ra>
// kernel: tpu_custom_call.1
= control target key start
LH: loop header
LB: loop body
LE: loop exit
PB: predicated region body
PF: predicated region fallthrough
CT: control target
= control target key end

     0   :  { %12 = vsyncpa [#allocation3], 0  ;;  %s785_s0 = inlined_call_operand.hbm [shape: f32[8,32], index: 0, kind: input, shape index: {}]   ;;  %s786_s1 = inlined_call_operand.hbm [shape: f32[32,128], index: 1, kind: input, shape index: {}]   ;;  %s787_s2 = inlined_call_operand.vmem [shape: f32[1,128], index: 2, kind: input, shape index: {}]   ;;  %s788_s3 = inlined_call_operand.hbm [shape: f32[128,128], index: 3, kind: input, shape index: {}]   ;;  %s789_s4 = inlined_call_operand.vmem [shape: f32[1,128], index: 4, kind: input, shape index: {}]   ;;  %s790_s5 = inlined_call_operand.hbm [shape: f32[128,256], index: 5, kind: input, shape index: {}]   ;;  %s791_s6 = inlined_call_operand.vmem [shape: f32[1,256], index: 6, kind: input, shape index: {}]   ;;  %s792_s7 = inlined_call_operand.hbm [shape: f32[8,256], index: 7, kind: output, shape index: {}]  }
   0x1   :  { %13 = vsyncpa [#allocation6], 0 }
   0x2   :  { %14 = vsyncpa [#allocation9], 0 }
   0x3   :  { %15 = vsyncpa [#allocation4], 0  ;;  %s658_s24 = smov [#allocation5]   ;;  %s540_s28 = scalar_lea.hbm %s786_s1, 512 }
   0x4   :  { %s31_s25 = sshll.u32 %s658_s24, 4  ;;  %p541_p0 = scmp.ne.s32.totalorder %s786_s1, %s540_s28  ;;  %s32_s25 = int_to_ptr.vmem [resolvable:$true] %s31_s25 }
   0x5   :  { %p544_p1 = scmp.lt.u32.totalorder %s540_s28, %s786_s1 }
   0x7   :  { %p546_p2 = pnand %p544_p1, %p541_p0 }
   0x9   :  { %549 = shalt.err (!%p546_p2)
}
   0xa   :  { %s550_s10 = scalar_lea.vmem %s32_s25, 512  ;;  %p555_p4 = scmp.lt.s32.totalorder %s32_s25, %s32_s25 }
   0xb   :  { %p551_p3 = scmp.ne.s32.totalorder %s32_s25, %s550_s10  ;;  %p556_p5 = scmp.lt.s32.totalorder %s550_s10, %s550_s10 }
   0xd   :  { %p557_p6 = por %p556_p5, %p555_p4 }
   0xf   :  { %p558_p7 = pnand %p557_p6, %p551_p3 }
  0x11   :  { %561 = shalt.err (!%p558_p7)
}
  0x12   :  { %s659_s11 = smov 128   ;;  %s660_s12 = smov 8  }
  0x13   :  { %37 = dma.hbm_to_vmem [thread:$0]  %s786_s1, 512, %s32_s25, [#allocation6], %s659_s11, %s659_s11, %s660_s12  }
  0x14   :  { %s661_s15 = smov [#allocation2]   ;;  %s662_s17 = smov [#allocation7]  }
  0x15   :  { %s22_s16 = sshll.u32 %s661_s15, 4  ;;  %s45_s18 = sshll.u32 %s662_s17, 4  ;;  %s23_s16 = int_to_ptr.vmem [resolvable:$true] %s22_s16  ;;  %s46_s18 = int_to_ptr.vmem [resolvable:$true] %s45_s18 }
  0x16   :  { %s562_s21 = scalar_lea.hbm %s785_s0, 128 }
  0x17   :  { %p563_p8 = scmp.ne.s32.totalorder %s785_s0, %s562_s21  ;;  %p566_p9 = scmp.lt.u32.totalorder %s562_s21, %s785_s0 }
  0x19   :  { %p568_p10 = pnand %p566_p9, %p563_p8 }
  0x1b   :  { %571 = shalt.err (!%p568_p10)
}
  0x1c   :  { %s572_s1 = scalar_lea.vmem %s23_s16, 128  ;;  %p577_p12 = scmp.lt.s32.totalorder %s23_s16, %s23_s16 }
  0x1d   :  { %p573_p11 = scmp.ne.s32.totalorder %s23_s16, %s572_s1  ;;  %p578_p13 = scmp.lt.s32.totalorder %s572_s1, %s572_s1 }
  0x1f   :  { %p579_p0 = por %p578_p13, %p577_p12 }
  0x21   :  { %p580_p1 = pnand %p579_p0, %p573_p11 }
  0x23   :  { %583 = shalt.err (!%p580_p1)
}
  0x24   :  { %25 = dma.hbm_to_vmem [thread:$0]  %s785_s0, 128, %s23_s16, [#allocation3]  }
  0x25   :  { %s584_s30 = scalar_lea.hbm %s788_s3, 2048 }
  0x26   :  { %p585_p2 = scmp.ne.s32.totalorder %s788_s3, %s584_s30  ;;  %p588_p3 = scmp.lt.u32.totalorder %s584_s30, %s788_s3 }
  0x28   :  { %p590_p4 = pnand %p588_p3, %p585_p2 }
  0x2a   :  { %593 = shalt.err (!%p590_p4)
}
  0x2b   :  { %s594_s14 = scalar_lea.vmem %s46_s18, 2048  ;;  %p599_p6 = scmp.lt.s32.totalorder %s46_s18, %s46_s18 }
  0x2c   :  { %p595_p5 = scmp.ne.s32.totalorder %s46_s18, %s594_s14  ;;  %p600_p7 = scmp.lt.s32.totalorder %s594_s14, %s594_s14 }
  0x2e   :  { %p601_p8 = por %p600_p7, %p599_p6 }
  0x30   :  { %p602_p9 = pnand %p601_p8, %p595_p5 }
  0x32   :  { %605 = shalt.err (!%p602_p9)
}
  0x33   :  { %51 = dma.hbm_to_vmem [thread:$0]  %s788_s3, 2048, %s46_s18, [#allocation6], %s659_s11, %s659_s11, %s660_s12  }
  0x34   :  { %s663_s16 = smov [#allocation8]   ;;  %s606_s21 = scalar_lea.hbm %s790_s5, 4096 }
  0x35   :  { %s59_s17 = sshll.u32 %s663_s16, 4  ;;  %p607_p10 = scmp.ne.s32.totalorder %s790_s5, %s606_s21  ;;  %s60_s17 = int_to_ptr.vmem [resolvable:$true] %s59_s17 }
  0x36   :  { %p610_p11 = scmp.lt.u32.totalorder %s606_s21, %s790_s5 }
  0x38   :  { %p612_p12 = pnand %p610_p11, %p607_p10 }
  0x3a   :  { %615 = shalt.err (!%p612_p12)
}
  0x3b   :  { %s616_s1 = scalar_lea.vmem %s60_s17, 4096  ;;  %p621_p0 = scmp.lt.s32.totalorder %s60_s17, %s60_s17 }
  0x3c   :  { %p617_p13 = scmp.ne.s32.totalorder %s60_s17, %s616_s1  ;;  %p622_p1 = scmp.lt.s32.totalorder %s616_s1, %s616_s1 }
  0x3e   :  { %p623_p2 = por %p622_p1, %p621_p0 }
  0x40   :  { %p624_p3 = pnand %p623_p2, %p617_p13 }
  0x42   :  { %627 = shalt.err (!%p624_p3)
}
  0x43   :  { %s664_s3 = smov 256   ;;  %s665_s11 = smov 16  }
  0x44   :  { %65 = dma.hbm_to_vmem [thread:$0]  %s790_s5, 4096, %s60_s17, [#allocation9], %s664_s3, %s664_s3, %s665_s11  }
  0x45   :  { %650 = dma.done.wait [#allocation3], 128  }
  0x46   :  { %651 = vsyncadd [#allocation3], 4294967168 }
  0x47   :  { %652 = dma.done.wait [#allocation6], 2560  }
  0x48   :  { %653 = vsyncadd [#allocation6], 4294964736 }
  0x49   :  { %654 = dma.done.wait [#allocation9], 4096  }
  0x4a   :  { %655 = vsyncadd [#allocation9], 4294963200  ;;  %v666_v0 = vmov 0.0|0.0   ;;  %vm667_vm0 = vmmov 0   ;;  %v668_v1 = vmov 0.0   ;;  %v81_v2 = vld [vmem:[#allocation5] sm:$0xff] }
  0x4b   :  { %466 = vmatprep.subr.bf16.mxu0 %v666_v0  ;;  %428 = vmatprep.mubr.msk.f32.mxu0 %vm667_vm0, %v668_v1  ;;  %v82_v3 = vld [vmem:[#allocation5 + $0x8] sm:$0xff]  ;;  %v83_v4 = vld [vmem:[#allocation5 + $0x10] sm:$0xff]  ;;  %v84_v6 = vld [vmem:[#allocation5 + $0x18] sm:$0xff]  ;;  %vm92_vm1 = vcmask 261120   ;;  %s669_s30 = smov [#allocation10]  }
  0x4c   :  { %472 = vmatprep.subr.bf16.mxu1 %v666_v0  ;;  %463 = vmatprep.mubr.msk.f32.mxu1 %vm667_vm0, %v668_v1  ;;  %v467_v5 = vpack.c.bf16 %v82_v3, %v81_v2  ;;  %v167_v7 = vld [vmem:[#allocation7] sm:$0xff]  ;;  %v168_v8 = vld [vmem:[#allocation7 + $0x8] sm:$0xff]  ;;  %v169_v9 = vld [vmem:[#allocation7 + $0x10] sm:$0xff]  ;;  %v470_v11 = vpack.c.bf16 %v84_v6, %v83_v4  ;;  %s384_s8 = sshll.u32 %s669_s30, 4  ;;  %s385_s8 = int_to_ptr.vmem [resolvable:$true] %s384_s8 }
  0x4d   :  { %v170_v10 = vld [vmem:[#allocation7 + $0x18] sm:$0xff]  ;;  %v473_v12 = vpack.c.bf16 %v168_v8, %v167_v7  ;;  %v171_v14 = vld [vmem:[#allocation7 + $0x20] sm:$0xff]  ;;  %v172_v15 = vld [vmem:[#allocation7 + $0x28] sm:$0xff]  ;;  %p633_p5 = scmp.lt.s32.totalorder %s385_s8, %s385_s8 }
  0x4e   :  { %468 = vmatpush3.bf16.msra.mxu0 %v467_v5  ;;  %v476_v13 = vpack.c.bf16 %v170_v10, %v169_v9  ;;  %v80_v16 = vld [vmem:[#allocation2] sm:$0xff]  ;;  %v479_v17 = vpack.c.bf16 %v172_v15, %v171_v14  ;;  %v173_v18 = vld [vmem:[#allocation7 + $0x30] sm:$0xff]  ;;  %v175_v21 = vld [vmem:[#allocation7 + $0x40] sm:$0xff] }
  0x4f   :  { %469 = vmatprep.subr.bf16.mxu0 %v666_v0  ;;  %474 = vmatpush3.bf16.msra.mxu1 %v473_v12  ;;  %v174_v19 = vld [vmem:[#allocation7 + $0x38] sm:$0xff]  ;;  %v176_v22 = vld [vmem:[#allocation7 + $0x48] sm:$0xff]  ;;  %v177_v24 = vld [vmem:[#allocation7 + $0x50] sm:$0xff] }
  0x50   :  { %475 = vmatprep.subr.bf16.mxu1 %v666_v0  ;;  %v482_v20 = vpack.c.bf16 %v174_v19, %v173_v18  ;;  %v485_v23 = vpack.c.bf16 %v176_v22, %v175_v21  ;;  %v178_v25 = vld [vmem:[#allocation7 + $0x58] sm:$0xff]  ;;  %v179_v27 = vld [vmem:[#allocation7 + $0x60] sm:$0xff]  ;;  %v180_v28 = vld [vmem:[#allocation7 + $0x68] sm:$0xff] }
  0x51   :  { %v488_v26 = vpack.c.bf16 %v178_v25, %v177_v24  ;;  %v491_v29 = vpack.c.bf16 %v180_v28, %v179_v27  ;;  %v181_v30 = vld [vmem:[#allocation7 + $0x70] sm:$0xff]  ;;  %v182_v31 = vld [vmem:[#allocation7 + $0x78] sm:$0xff]  ;;  %v262_v33 = vld [vmem:[#allocation8 + $0x8] sm:$0xff]  ;;  %v295_v27 = vlaneseq }
  0x52   :  { %471 = vmatpush3.bf16.msra.mxu0 %v470_v11  ;;  %v494_v32 = vpack.c.bf16 %v182_v31, %v181_v30  ;;  %v264_v34 = vld [vmem:[#allocation8 + $0x18] sm:$0xff]  ;;  %v261_v35 = vld [vmem:[#allocation8] sm:$0xff]  ;;  %v263_v37 = vld [vmem:[#allocation8 + $0x10] sm:$0xff] }
  0x53   :  { %477 = vmatpush3.bf16.msra.mxu1 %v476_v13  ;;  %v496_v36 = vpack.c.bf16 %v264_v34, %v262_v33  ;;  %v266_v38 = vld [vmem:[#allocation8 + $0x28] sm:$0xff]  ;;  %v268_v39 = vld [vmem:[#allocation8 + $0x38] sm:$0xff]  ;;  %v498_v40 = vpack.c.bf16 %v263_v37, %v261_v35  ;;  %v265_v42 = vld [vmem:[#allocation8 + $0x20] sm:$0xff]  ;;  %v296_v28 = vshrl.u32 %v295_v27, 7 }
  0x54   :  { %478 = vmatprep.subr.bf16.mxu1 %v666_v0  ;;  %v500_v41 = vpack.c.bf16 %v268_v39, %v266_v38  ;;  %v267_v43 = vld [vmem:[#allocation8 + $0x30] sm:$0xff]  ;;  %v270_v44 = vld [vmem:[#allocation8 + $0x48] sm:$0xff]  ;;  %v272_v45 = vld [vmem:[#allocation8 + $0x58] sm:$0xff] }
  0x55   :  { %429 = vmatmul.mubr.msk.f32.vlgmr.msra.gmra.mrb[0].mxu0 %vm92_vm1, %v80_v16  ;;  %497 = vmatprep.subr.bf16.mxu0 %v496_v36  ;;  %v502_v46 = vpack.c.bf16 %v267_v43, %v265_v42  ;;  %v504_v47 = vpack.c.bf16 %v272_v45, %v270_v44  ;;  %v269_v48 = vld [vmem:[#allocation8 + $0x40] sm:$0xff]  ;;  %v271_v49 = vld [vmem:[#allocation8 + $0x50] sm:$0xff]  ;;  %v274_v50 = vld [vmem:[#allocation8 + $0x68] sm:$0xff]  ;;  %v301_v31 = vsub.s32 1, %v296_v28 }
  0x56   :  { %369 = vmatprep.mubr.f32.mxu0 %v668_v1  ;;  %499 = vmatpush1.bf16.msra.mxu0 %v498_v40  ;;  %v276_v51 = vld [vmem:[#allocation8 + $0x78] sm:$0xff]  ;;  %v506_v52 = vpack.c.bf16 %v271_v49, %v269_v48  ;;  %v273_v54 = vld [vmem:[#allocation8 + $0x60] sm:$0xff]  ;;  %v275_v55 = vld [vmem:[#allocation8 + $0x70] sm:$0xff] }
  0x57   :  { %480 = vmatpush3.bf16.msra.mxu1 %v479_v17  ;;  %501 = vmatprep.subr.bf16.mxu0 %v500_v41  ;;  %v508_v53 = vpack.c.bf16 %v276_v51, %v274_v50  ;;  %v278_v56 = vld [vmem:[#allocation8 + $0x88] sm:$0xff]  ;;  %v280_v57 = vld [vmem:[#allocation8 + $0x98] sm:$0xff]  ;;  %v510_v58 = vpack.c.bf16 %v275_v55, %v273_v54  ;;  %v277_v60 = vld [vmem:[#allocation8 + $0x80] sm:$0xff] }
  0x58   :  { %481 = vmatprep.subr.bf16.mxu1 %v666_v0  ;;  %v512_v59 = vpack.c.bf16 %v280_v57, %v278_v56  ;;  %v279_v61 = vld [vmem:[#allocation8 + $0x90] sm:$0xff]  ;;  %v282_v62 = vld [vmem:[#allocation8 + $0xa8] sm:$0xff]  ;;  %v284_v63 = vld [vmem:[#allocation8 + $0xb8] sm:$0xff] }
  0x59   :  { %v516_v1 = vpack.c.bf16 %v284_v63, %v282_v62  ;;  %v281_v2 = vld [vmem:[#allocation8 + $0xa0] sm:$0xff]  ;;  %v283_v3 = vld [vmem:[#allocation8 + $0xb0] sm:$0xff]  ;;  %v286_v4 = vld [vmem:[#allocation8 + $0xc8] sm:$0xff] }
  0x5a   :  { %503 = vmatpush1.bf16.msra.mxu0 %v502_v46  ;;  %v288_v5 = vld [vmem:[#allocation8 + $0xd8] sm:$0xff]  ;;  %v518_v6 = vpack.c.bf16 %v283_v3, %v281_v2  ;;  %v285_v8 = vld [vmem:[#allocation8 + $0xc0] sm:$0xff]  ;;  %v287_v9 = vld [vmem:[#allocation8 + $0xd0] sm:$0xff] }
  0x5b   :  { %483 = vmatpush3.bf16.msra.mxu1 %v482_v20  ;;  %505 = vmatprep.subr.bf16.mxu0 %v504_v47  ;;  %v520_v7 = vpack.c.bf16 %v288_v5, %v286_v4  ;;  %v522_v10 = vpack.c.bf16 %v287_v9, %v285_v8  ;;  %v395_v11 = vld [vmem:[%s787_s2] ss:$0 sm:$0xff]  ;;  %v290_v16 = vld [vmem:[#allocation8 + $0xe8] sm:$0xff]  ;;  %v289_v19 = vld [vmem:[#allocation8 + $0xe0] sm:$0xff] }
  0x5c   :  { %484 = vmatprep.subr.bf16.mxu1 %v666_v0  ;;  %v292_v17 = vld [vmem:[#allocation8 + $0xf8] sm:$0xff]  ;;  %v291_v20 = vld [vmem:[#allocation8 + $0xf0] sm:$0xff] }
  0x5d   :  { %v524_v18 = vpack.c.bf16 %v292_v17, %v290_v16  ;;  %v526_v21 = vpack.c.bf16 %v291_v20, %v289_v19  ;;  %v397_v22 = vld [vmem:[%s789_s4] ss:$0 sm:$0xff]  ;;  %s628_s4 = scalar_lea.vmem %s385_s8, 256 }
  0x5e   :  { %507 = vmatpush1.bf16.msra.mxu0 %v506_v52  ;;  %v293_v30 = vld [vmem:[%s791_s6] sm:$0x3]  ;;  %p629_p4 = scmp.ne.s32.totalorder %s385_s8, %s628_s4  ;;  %p634_p6 = scmp.lt.s32.totalorder %s628_s4, %s628_s4 }
  0x5f   :  { %486 = vmatpush3.bf16.msra.mxu1 %v485_v23  ;;  %509 = vmatprep.subr.bf16.mxu0 %v508_v53  ;;  %v302_v33 = vrot.slane %v293_v30, %v301_v31 }
  0x60   :  { %487 = vmatprep.subr.bf16.mxu1 %v666_v0  ;;  %p635_p7 = por %p634_p6, %p633_p5 }
  0x62   :  { %511 = vmatpush1.bf16.msra.mxu0 %v510_v58  ;;  %p636_p8 = pnand %p635_p7, %p629_p4 }
  0x63   :  { %489 = vmatpush3.bf16.msra.mxu1 %v488_v26  ;;  %513 = vmatprep.subr.bf16.mxu0 %v512_v59 }
  0x64   :  { %490 = vmatprep.subr.bf16.mxu1 %v666_v0 }
  0x67   :  { %492 = vmatpush3.bf16.msra.mxu1 %v491_v29  ;;  %v297_v29 = vsub.s32 0, %v296_v28 }
  0x68   :  { %493 = vmatprep.subr.bf16.mxu1 %v666_v0  ;;  %v514_v0 = vpack.c.bf16 %v279_v61, %v277_v60 }
  0x6a   :  { %515 = vmatpush1.bf16.msra.mxu0 %v514_v0 }
  0x6b   :  { %495 = vmatpush3.bf16.msra.mxu1 %v494_v32  ;;  %517 = vmatprep.subr.bf16.mxu0 %v516_v1  ;;  %v298_v32 = vrot.slane %v293_v30, %v297_v29 }
  0x6e   :  { %519 = vmatpush1.bf16.msra.mxu0 %v518_v6 }
  0x6f   :  { %521 = vmatprep.subr.bf16.mxu0 %v520_v7 }
  0x72   :  { %523 = vmatpush1.bf16.msra.mxu0 %v522_v10 }
  0x73   :  { %525 = vmatprep.subr.bf16.mxu0 %v524_v18 }
  0x76   :  { %527 = vmatpush1.bf16.msra.mxu0 %v526_v21 }
 0x128   :  { %v162_v12 = vpop.f32.mrb[0].mxu0 }
 0x129   :  { %v163_v13 = vadd.f32 %v395_v11, %v162_v12  ;;  %v430_v14 = vpop.f32.mrb[1].mxu0 }
 0x12b   :  { %v166_v15 = vmax.f32 %v163_v13, 0.0 }
 0x12d   :  { %464 = vmatmul.mubr.f32.vlgmr.msra.gmra.mrb[0].mxu1 %v166_v15 }
 0x200   :  { %v256_v23 = vpop.f32.mrb[0].mxu1 }
 0x201   :  { %v257_v24 = vadd.f32 %v397_v22, %v256_v23  ;;  %v465_v25 = vpop.f32.mrb[1].mxu1 }
 0x203   :  { %v260_v26 = vmax.f32 %v257_v24, 0.0 }
 0x205   :  { %370 = vmatmul.mubr.f32.vlgmr.msra.gmra.mrb[2].mxu0 %v260_v26 }
 0x2d8   :  { %v371_v34 = vpop.f32.mrb[2].mxu0 }
 0x2d9   :  { %v372_v35 = vadd.f32 %v371_v34, %v298_v32  ;;  %v373_v36 = vpop.f32.mrb[3].mxu0 }
 0x2da   :  { %v374_v37 = vadd.f32 %v373_v36, %v302_v33 }
 0x2db   :  { %376 = vst [vmem:[#allocation10] sm:$0xff] %v372_v35 }
 0x2dc   :  { %377 = vst [vmem:[#allocation10 + $0x8] sm:$0xff] %v374_v37 }
 0x2dd   :  { %639 = shalt.err (!%p636_p8)
}
 0x2de   :  { %s640_s10 = scalar_lea.hbm %s792_s7, 256 }
 0x2df   :  { %p641_p9 = scmp.ne.s32.totalorder %s792_s7, %s640_s10  ;;  %p644_p10 = scmp.lt.u32.totalorder %s640_s10, %s792_s7 }
 0x2e1   :  { %p646_p11 = pnand %p644_p10, %p641_p9 }
 0x2e3   :  { %649 = shalt.err (!%p646_p11)
}
 0x2e4   :  { %387 = dma.vmem_to_hbm [thread:$0]  %s385_s8, 256, %s792_s7, [#allocation4]  }
 0x2e5   :  { %656 = dma.done.wait [#allocation4], 256  }
 0x2e6   :  { %657 = vsyncadd [#allocation4], 4294967040 }
 0x2e7   :  { %391 = vsyncpa [#allocation3], 1 }
 0x2e8   :  { %392 = vsyncpa [#allocation6], 1 }
 0x2e9   :  { %393 = vsyncpa [#allocation9], 1 }
 0x2ea   :  { %394 = vsyncpa [#allocation4], 1 }

</bundles_post_ra>
